<compile_context>
chip_gen: v7x
topology: tpu7x:2x2x1
jax: 0.10.0
libtpu: 0.0.40
codegen_flags: <defaults>
</compile_context>

<pallas_src>
import functools

import jax
import jax.numpy as jnp
from jax.experimental import pallas as pl
from jax.experimental.pallas import tpu as pltpu  # noqa: F401  (TPU backend)

_LANE = 128
_NEG_INF = -1e30  # large finite negative: exp() underflows to 0, no (-inf)-(-inf) NaNs


def _round_up(n, m):
    return ((n + m - 1) // m) * m


def actor_kernel(x_ref, w1_ref, b1_ref, w2_ref, b2_ref, w3_ref, b3_ref,
                 out_ref, *, action_size):
    x = x_ref[...]                                                    # (B, S) f32

    # Linear1 + ReLU  (f32 MXU operands, f32 accumulate)
    h1 = jnp.dot(x, w1_ref[...], preferred_element_type=jnp.float32) + b1_ref[...]
    h1 = jnp.maximum(h1, 0.0)

    # Linear2 + ReLU
    h2 = jnp.dot(h1, w2_ref[...], preferred_element_type=jnp.float32) + b2_ref[...]
    h2 = jnp.maximum(h2, 0.0)

    # Linear3 -> logits (lane-padded to A_pad)
    logits = jnp.dot(h2, w3_ref[...], preferred_element_type=jnp.float32) + b3_ref[...]

    # Mask padded action lanes so they carry no softmax mass.
    a_pad = logits.shape[-1]
    lane_valid = jax.lax.broadcasted_iota(jnp.int32, (1, a_pad), 1) < action_size
    logits = jnp.where(lane_valid, logits, _NEG_INF)

    # softmax over dim=-1 (the Categorical's probability table) -> out slab row 0
    m1 = jnp.max(logits, axis=-1, keepdims=True)                      # (B, 1)
    e1 = jnp.exp(logits - m1)                                         # padded lanes -> 0
    out_ref[0, :, :] = e1 * pl.reciprocal(
        jnp.sum(e1, axis=-1, keepdims=True), approx=True)

    # softmax over dim=0 with a true per-column max (robust: no column can underflow
    # to all-zero, so the denominator is always >= 1) -> out slab row 1
    m0 = jnp.max(logits, axis=0, keepdims=True)                       # (1, A_pad) XLU reduce
    e0 = jnp.exp(logits - m0)                                         # (B, A_pad)
    col = jnp.sum(e0, axis=0, keepdims=True)                          # (1, A_pad), >= 1
    out_ref[1, :, :] = e0 * pl.reciprocal(col, approx=True)


def prepare_params(params):
    """One-time weight prep (do NOT call per forward): pads the action dim to lane
    granularity and normalizes bias shapes.  Everything stays f32."""
    w1, b1, w2, b2, w3, b3 = params
    A = w3.shape[1]
    A_pad = _round_up(max(A, _LANE), _LANE)
    w3_p = jnp.pad(w3.astype(jnp.float32), ((0, 0), (0, A_pad - A)))
    b3_p = jnp.pad(b3.reshape(1, -1).astype(jnp.float32), ((0, 0), (0, A_pad - A)))
    return (
        w1.astype(jnp.float32), b1.reshape(1, -1).astype(jnp.float32),
        w2.astype(jnp.float32), b2.reshape(1, -1).astype(jnp.float32),
        w3_p, b3_p,
    )


@functools.partial(jax.jit, static_argnames=("action_size",))
def actor_forward(state, prepared_params, *, action_size):
    """state: (B, state_size) f32, prepared_params from prepare_params().

    Returns (dist_probs, probs0), both (B, action_size) f32:
      dist_probs = softmax(logits, axis=-1)   (defines the Categorical distribution)
      probs0     = softmax(logits, axis=0)
    """
    w1, b1, w2, b2, w3, b3 = prepared_params
    B, S = state.shape
    H1, H2 = w1.shape[1], w2.shape[1]
    A_pad = w3.shape[1]

    def full_spec(shape):
        return pl.BlockSpec(shape, lambda: (0,) * len(shape))

    cost = pl.CostEstimate(
        flops=2 * B * (S * H1 + H1 * H2 + H2 * A_pad),
        transcendentals=2 * B * A_pad,
        bytes_accessed=4 * (state.size + w1.size + b1.size + w2.size + b2.size
                            + w3.size + b3.size + 2 * B * A_pad),
    )

    out = pl.pallas_call(
        functools.partial(actor_kernel, action_size=action_size),
        out_shape=jax.ShapeDtypeStruct((2, B, A_pad), jnp.float32),
        grid=(),
        in_specs=[
            full_spec(state.shape),
            full_spec(w1.shape), full_spec(b1.shape),
            full_spec(w2.shape), full_spec(b2.shape),
            full_spec(w3.shape), full_spec(b3.shape),
        ],
        out_specs=full_spec((2, B, A_pad)),
        cost_estimate=cost,
    )(state, w1, b1, w2, b2, w3, b3)

    # Lane-dense stores inside; slice the action padding off and split outside.
    return out[0, :, :action_size], out[1, :, :action_size]


def init_params(key, state_size, action_size):
    """Deterministic init mimicking nn.Linear shapes; weights stored as (in, out), f32."""
    ks = jax.random.split(key, 6)

    def linear(kw, kb, fan_in, fan_out):
        bound = 1.0 / jnp.sqrt(fan_in)
        w = jax.random.uniform(kw, (fan_in, fan_out), jnp.float32, -bound, bound)
        b = jax.random.uniform(kb, (1, fan_out), jnp.float32, -bound, bound)
        return w, b

    w1, b1 = linear(ks[0], ks[1], state_size, 128)
    w2, b2 = linear(ks[2], ks[3], 128, 256)
    w3, b3 = linear(ks[4], ks[5], 256, action_size)
    return (w1, b1, w2, b2, w3, b3)


if __name__ == "__main__":
    key = jax.random.PRNGKey(0)
    k_state, k_params = jax.random.split(key)

    B, STATE_SIZE, ACTION_SIZE = 8, 32, 16
    state = jax.random.normal(k_state, (B, STATE_SIZE), jnp.float32)
    params = init_params(k_params, STATE_SIZE, ACTION_SIZE)
    prepared = prepare_params(params)          # one-time: padding/casts hoisted out

    dist_probs, probs0 = actor_forward(state, prepared, action_size=ACTION_SIZE)
    jax.block_until_ready((dist_probs, probs0))
    assert dist_probs.shape == (B, ACTION_SIZE) and probs0.shape == (B, ACTION_SIZE)

    # Pure-JAX f32 reference (original module semantics).
    w1, b1, w2, b2, w3, b3 = params
    h = jnp.maximum(state @ w1 + b1, 0.0)
    h = jnp.maximum(h @ w2 + b2, 0.0)
    logits = h @ w3 + b3
    ref_dist = jax.nn.softmax(logits, axis=-1)
    ref_p0 = jax.nn.softmax(logits, axis=0)

    assert not bool(jnp.any(jnp.isnan(dist_probs))) and not bool(jnp.any(jnp.isnan(probs0)))
    assert jnp.allclose(dist_probs, ref_dist, atol=2e-2)
    assert jnp.allclose(probs0, ref_p0, atol=2e-2)
    assert jnp.allclose(jnp.sum(dist_probs, axis=-1), 1.0, atol=3e-3)
    assert jnp.allclose(jnp.sum(probs0, axis=0), 1.0, atol=3e-3)

    print("KERNEL_OK")
</pallas_src>

<mosaic_0001>
module attributes {stable_mosaic.version = 11 : i64} {
  func.func @actor_kernel(%arg0: memref<8x32xf32, #tpu.memory_space<vmem>>, %arg1: memref<32x128xf32, #tpu.memory_space<vmem>>, %arg2: memref<1x128xf32, #tpu.memory_space<vmem>>, %arg3: memref<128x256xf32, #tpu.memory_space<vmem>>, %arg4: memref<1x256xf32, #tpu.memory_space<vmem>>, %arg5: memref<256x128xf32, #tpu.memory_space<vmem>>, %arg6: memref<1x128xf32, #tpu.memory_space<vmem>>, %arg7: memref<2x8x128xf32, #tpu.memory_space<vmem>>) attributes {dimension_semantics = [], scalar_prefetch = 0 : i64, scratch_operands = 0 : i64, tpu.core_type = #tpu.core_type<tc>} {
    %c0 = arith.constant 0 : index
    %c0_0 = arith.constant 0 : index
    %0 = vector.load %arg0[%c0, %c0_0] : memref<8x32xf32, #tpu.memory_space<vmem>>, vector<8x32xf32>
    %c0_1 = arith.constant 0 : index
    %c0_2 = arith.constant 0 : index
    %1 = vector.load %arg1[%c0_1, %c0_2] : memref<32x128xf32, #tpu.memory_space<vmem>>, vector<32x128xf32>
    %cst = arith.constant dense<0.000000e+00> : vector<8x128xf32>
    %2 = tpu.matmul %0, %1, %cst {dimension_numbers = #tpu.dot_dimension_numbers<[1], [0], [0], [1], [0, 0, 1, 1], [], []>} : vector<8x32xf32>, vector<32x128xf32>, vector<8x128xf32> -> vector<8x128xf32>
    %c0_3 = arith.constant 0 : index
    %c0_4 = arith.constant 0 : index
    %3 = vector.load %arg2[%c0_3, %c0_4] : memref<1x128xf32, #tpu.memory_space<vmem>>, vector<1x128xf32>
    %4 = vector.broadcast %3 : vector<1x128xf32> to vector<8x128xf32>
    %5 = arith.addf %2, %4 : vector<8x128xf32>
    %cst_5 = arith.constant 0.000000e+00 : f32
    %6 = vector.broadcast %cst_5 : f32 to vector<8x128xf32>
    %7 = arith.maximumf %5, %6 : vector<8x128xf32>
    %c0_6 = arith.constant 0 : index
    %c0_7 = arith.constant 0 : index
    %8 = vector.load %arg3[%c0_6, %c0_7] : memref<128x256xf32, #tpu.memory_space<vmem>>, vector<128x256xf32>
    %cst_8 = arith.constant dense<0.000000e+00> : vector<8x256xf32>
    %9 = tpu.matmul %7, %8, %cst_8 {dimension_numbers = #tpu.dot_dimension_numbers<[1], [0], [0], [1], [0, 0, 1, 1], [], []>} : vector<8x128xf32>, vector<128x256xf32>, vector<8x256xf32> -> vector<8x256xf32>
    %c0_9 = arith.constant 0 : index
    %c0_10 = arith.constant 0 : index
    %10 = vector.load %arg4[%c0_9, %c0_10] : memref<1x256xf32, #tpu.memory_space<vmem>>, vector<1x256xf32>
    %11 = vector.broadcast %10 : vector<1x256xf32> to vector<8x256xf32>
    %12 = arith.addf %9, %11 : vector<8x256xf32>
    %cst_11 = arith.constant 0.000000e+00 : f32
    %13 = vector.broadcast %cst_11 : f32 to vector<8x256xf32>
    %14 = arith.maximumf %12, %13 : vector<8x256xf32>
    %c0_12 = arith.constant 0 : index
    %c0_13 = arith.constant 0 : index
    %15 = vector.load %arg5[%c0_12, %c0_13] : memref<256x128xf32, #tpu.memory_space<vmem>>, vector<256x128xf32>
    %cst_14 = arith.constant dense<0.000000e+00> : vector<8x128xf32>
    %16 = tpu.matmul %14, %15, %cst_14 {dimension_numbers = #tpu.dot_dimension_numbers<[1], [0], [0], [1], [0, 0, 1, 1], [], []>} : vector<8x256xf32>, vector<256x128xf32>, vector<8x128xf32> -> vector<8x128xf32>
    %c0_15 = arith.constant 0 : index
    %c0_16 = arith.constant 0 : index
    %17 = vector.load %arg6[%c0_15, %c0_16] : memref<1x128xf32, #tpu.memory_space<vmem>>, vector<1x128xf32>
    %18 = vector.broadcast %17 : vector<1x128xf32> to vector<8x128xf32>
    %19 = arith.addf %16, %18 : vector<8x128xf32>
    %20 = tpu.iota {dimensions = array<i32: 1>} : vector<1x128xi32>
    %c16_i32 = arith.constant 16 : i32
    %21 = vector.broadcast %c16_i32 : i32 to vector<1x128xi32>
    %22 = arith.cmpi slt, %20, %21 : vector<1x128xi32>
    %cst_17 = arith.constant -1.000000e+30 : f32
    %23 = vector.shape_cast %22 : vector<1x128xi1> to vector<1x128xi1>
    %24 = vector.broadcast %23 : vector<1x128xi1> to vector<8x128xi1>
    %25 = vector.broadcast %cst_17 : f32 to vector<8x128xf32>
    %26 = arith.select %24, %19, %25 : vector<8x128xi1>, vector<8x128xf32>
    %cst_18 = arith.constant dense<0xFF800000> : vector<8xf32>
    %27 = vector.multi_reduction <maximumf>, %26, %cst_18 [1] : vector<8x128xf32> to vector<8xf32>
    %28 = vector.shape_cast %27 : vector<8xf32> to vector<8x1xf32>
    %29 = vector.broadcast %28 : vector<8x1xf32> to vector<8x128xf32>
    %30 = arith.subf %26, %29 : vector<8x128xf32>
    %31 = math.exp %30 : vector<8x128xf32>
    %cst_19 = arith.constant dense<0.000000e+00> : vector<8xf32>
    %32 = vector.multi_reduction <add>, %31, %cst_19 [1] : vector<8x128xf32> to vector<8xf32>
    %33 = vector.shape_cast %32 : vector<8xf32> to vector<8x1xf32>
    %34 = tpu.reciprocal %33 {approx = true} : vector<8x1xf32> -> vector<8x1xf32>
    %35 = vector.broadcast %34 : vector<8x1xf32> to vector<8x128xf32>
    %36 = arith.mulf %31, %35 : vector<8x128xf32>
    %c0_20 = arith.constant 0 : index
    %c0_21 = arith.constant 0 : index
    %c0_22 = arith.constant 0 : index
    %37 = vector.load %arg7[%c0_20, %c0_21, %c0_22] : memref<2x8x128xf32, #tpu.memory_space<vmem>>, vector<1x8x128xf32>
    %38 = vector.shape_cast %37 : vector<1x8x128xf32> to vector<8x128xf32>
    %39 = vector.shape_cast %36 : vector<8x128xf32> to vector<1x8x128xf32>
    tpu.vector_store %arg7[%c0_20, %c0_21, %c0_22], %39 {strides = array<i32>} : memref<2x8x128xf32, #tpu.memory_space<vmem>>, vector<1x8x128xf32>,
    %cst_23 = arith.constant dense<0xFF800000> : vector<128xf32>
    %40 = vector.multi_reduction <maximumf>, %26, %cst_23 [0] : vector<8x128xf32> to vector<128xf32>
    %41 = vector.shape_cast %40 : vector<128xf32> to vector<1x128xf32>
    %42 = vector.broadcast %41 : vector<1x128xf32> to vector<8x128xf32>
    %43 = arith.subf %26, %42 : vector<8x128xf32>
    %44 = math.exp %43 : vector<8x128xf32>
    %cst_24 = arith.constant dense<0.000000e+00> : vector<128xf32>
    %45 = vector.multi_reduction <add>, %44, %cst_24 [0] : vector<8x128xf32> to vector<128xf32>
    %46 = vector.shape_cast %45 : vector<128xf32> to vector<1x128xf32>
    %47 = tpu.reciprocal %46 {approx = true} : vector<1x128xf32> -> vector<1x128xf32>
    %48 = vector.broadcast %47 : vector<1x128xf32> to vector<8x128xf32>
    %49 = arith.mulf %44, %48 : vector<8x128xf32>
    %c1 = arith.constant 1 : index
    %c0_25 = arith.constant 0 : index
    %c0_26 = arith.constant 0 : index
    %50 = vector.load %arg7[%c1, %c0_25, %c0_26] : memref<2x8x128xf32, #tpu.memory_space<vmem>>, vector<1x8x128xf32>
    %51 = vector.shape_cast %50 : vector<1x8x128xf32> to vector<8x128xf32>
    %52 = vector.shape_cast %49 : vector<8x128xf32> to vector<1x8x128xf32>
    tpu.vector_store %arg7[%c1, %c0_25, %c0_26], %52 {strides = array<i32>} : memref<2x8x128xf32, #tpu.memory_space<vmem>>, vector<1x8x128xf32>,
    return
  }
}

</mosaic_0001>

<bundles_post_ra>
// kernel: actor_forward.1
= control target key start
LH: loop header
LB: loop body
LE: loop exit
PB: predicated region body
PF: predicated region fallthrough
CT: control target
= control target key end

     0   :  { %12 = vsyncpa [#allocation3], 0  ;;  %s792_s0 = inlined_call_operand.hbm [shape: f32[8,32], index: 0, kind: input, shape index: {}]   ;;  %s793_s1 = inlined_call_operand.hbm [shape: f32[32,128], index: 1, kind: input, shape index: {}]   ;;  %s794_s2 = inlined_call_operand.vmem [shape: f32[1,128], index: 2, kind: input, shape index: {}]   ;;  %s795_s3 = inlined_call_operand.hbm [shape: f32[128,256], index: 3, kind: input, shape index: {}]   ;;  %s796_s4 = inlined_call_operand.vmem [shape: f32[1,256], index: 4, kind: input, shape index: {}]   ;;  %s797_s5 = inlined_call_operand.hbm [shape: f32[256,128], index: 5, kind: input, shape index: {}]   ;;  %s798_s6 = inlined_call_operand.vmem [shape: f32[1,128], index: 6, kind: input, shape index: {}]   ;;  %s799_s7 = inlined_call_operand.vmem [shape: f32[2,8,128], index: 7, kind: output, shape index: {}]  }
   0x1   :  { %13 = vsyncpa [#allocation5], 0 }
   0x2   :  { %14 = vsyncpa [#allocation8], 0  ;;  %s672_s24 = smov [#allocation4]   ;;  %s578_s28 = scalar_lea.hbm %s793_s1, 512 }
   0x3   :  { %s30_s25 = sshll.u32 %s672_s24, 4  ;;  %p579_p0 = scmp.ne.s32.totalorder %s793_s1, %s578_s28  ;;  %s31_s25 = int_to_ptr.vmem [resolvable:$true] %s30_s25 }
   0x4   :  { %p582_p1 = scmp.lt.u32.totalorder %s578_s28, %s793_s1 }
   0x6   :  { %p584_p2 = pnand %p582_p1, %p579_p0 }
   0x8   :  { %587 = shalt.err (!%p584_p2)
}
   0x9   :  { %s588_s10 = scalar_lea.vmem %s31_s25, 512  ;;  %p593_p4 = scmp.lt.s32.totalorder %s31_s25, %s31_s25 }
   0xa   :  { %p589_p3 = scmp.ne.s32.totalorder %s31_s25, %s588_s10  ;;  %p594_p5 = scmp.lt.s32.totalorder %s588_s10, %s588_s10 }
   0xc   :  { %p595_p6 = por %p594_p5, %p593_p4 }
   0xe   :  { %p596_p7 = pnand %p595_p6, %p589_p3 }
  0x10   :  { %599 = shalt.err (!%p596_p7)
}
  0x11   :  { %s673_s11 = smov 128   ;;  %s674_s12 = smov 8  }
  0x12   :  { %36 = dma.hbm_to_vmem [thread:$0]  %s793_s1, 512, %s31_s25, [#allocation5], %s673_s11, %s673_s11, %s674_s12  }
  0x13   :  { %s675_s15 = smov [#allocation2]   ;;  %s676_s17 = smov [#allocation6]  }
  0x14   :  { %s21_s16 = sshll.u32 %s675_s15, 4  ;;  %s44_s18 = sshll.u32 %s676_s17, 4  ;;  %s22_s16 = int_to_ptr.vmem [resolvable:$true] %s21_s16  ;;  %s45_s18 = int_to_ptr.vmem [resolvable:$true] %s44_s18 }
  0x15   :  { %s600_s21 = scalar_lea.hbm %s792_s0, 128 }
  0x16   :  { %p601_p8 = scmp.ne.s32.totalorder %s792_s0, %s600_s21  ;;  %p604_p9 = scmp.lt.u32.totalorder %s600_s21, %s792_s0 }
  0x18   :  { %p606_p10 = pnand %p604_p9, %p601_p8 }
  0x1a   :  { %609 = shalt.err (!%p606_p10)
}
  0x1b   :  { %s610_s1 = scalar_lea.vmem %s22_s16, 128  ;;  %p615_p12 = scmp.lt.s32.totalorder %s22_s16, %s22_s16 }
  0x1c   :  { %p611_p11 = scmp.ne.s32.totalorder %s22_s16, %s610_s1  ;;  %p616_p13 = scmp.lt.s32.totalorder %s610_s1, %s610_s1 }
  0x1e   :  { %p617_p0 = por %p616_p13, %p615_p12 }
  0x20   :  { %p618_p1 = pnand %p617_p0, %p611_p11 }
  0x22   :  { %621 = shalt.err (!%p618_p1)
}
  0x23   :  { %24 = dma.hbm_to_vmem [thread:$0]  %s792_s0, 128, %s22_s16, [#allocation3]  }
  0x24   :  { %s622_s30 = scalar_lea.hbm %s795_s3, 4096 }
  0x25   :  { %p623_p2 = scmp.ne.s32.totalorder %s795_s3, %s622_s30  ;;  %p626_p3 = scmp.lt.u32.totalorder %s622_s30, %s795_s3 }
  0x27   :  { %p628_p4 = pnand %p626_p3, %p623_p2 }
  0x29   :  { %631 = shalt.err (!%p628_p4)
}
  0x2a   :  { %s632_s14 = scalar_lea.vmem %s45_s18, 4096  ;;  %p637_p6 = scmp.lt.s32.totalorder %s45_s18, %s45_s18 }
  0x2b   :  { %p633_p5 = scmp.ne.s32.totalorder %s45_s18, %s632_s14  ;;  %p638_p7 = scmp.lt.s32.totalorder %s632_s14, %s632_s14 }
  0x2d   :  { %p639_p8 = por %p638_p7, %p637_p6 }
  0x2f   :  { %p640_p9 = pnand %p639_p8, %p633_p5 }
  0x31   :  { %643 = shalt.err (!%p640_p9)
}
  0x32   :  { %s677_s0 = smov 256   ;;  %s678_s15 = smov 16  }
  0x33   :  { %50 = dma.hbm_to_vmem [thread:$0]  %s795_s3, 4096, %s45_s18, [#allocation5], %s677_s0, %s677_s0, %s678_s15  }
  0x34   :  { %s679_s19 = smov [#allocation7]   ;;  %s644_s23 = scalar_lea.hbm %s797_s5, 4096 }
  0x35   :  { %s58_s20 = sshll.u32 %s679_s19, 4  ;;  %p645_p10 = scmp.ne.s32.totalorder %s797_s5, %s644_s23  ;;  %s59_s20 = int_to_ptr.vmem [resolvable:$true] %s58_s20 }
  0x36   :  { %p648_p11 = scmp.lt.u32.totalorder %s644_s23, %s797_s5 }
  0x38   :  { %p650_p12 = pnand %p648_p11, %p645_p10 }
  0x3a   :  { %653 = shalt.err (!%p650_p12)
}
  0x3b   :  { %s654_s27 = scalar_lea.vmem %s59_s20, 4096  ;;  %p659_p0 = scmp.lt.s32.totalorder %s59_s20, %s59_s20 }
  0x3c   :  { %p655_p13 = scmp.ne.s32.totalorder %s59_s20, %s654_s27  ;;  %p660_p1 = scmp.lt.s32.totalorder %s654_s27, %s654_s27 }
  0x3e   :  { %p661_p2 = por %p660_p1, %p659_p0 }
  0x40   :  { %p662_p3 = pnand %p661_p2, %p655_p13 }
  0x42   :  { %665 = shalt.err (!%p662_p3)
}
  0x43   :  { %64 = dma.hbm_to_vmem [thread:$0]  %s797_s5, 4096, %s59_s20, [#allocation8], %s673_s11, %s673_s11, %s674_s12  }
  0x44   :  { %666 = dma.done.wait [#allocation3], 128  }
  0x45   :  { %667 = vsyncadd [#allocation3], 4294967168 }
  0x46   :  { %668 = dma.done.wait [#allocation5], 4608  }
  0x47   :  { %669 = vsyncadd [#allocation5], 4294962688 }
  0x48   :  { %670 = dma.done.wait [#allocation8], 4096  }
  0x49   :  { %671 = vsyncadd [#allocation8], 4294963200  ;;  %v680_v0 = vmov 0.0|0.0   ;;  %vm681_vm0 = vmmov 0   ;;  %v682_v1 = vmov 0.0   ;;  %v80_v2 = vld [vmem:[#allocation4] sm:$0xff] }
  0x4a   :  { %489 = vmatprep.subr.bf16.mxu0 %v680_v0  ;;  %486 = vmatprep.mubr.msk.f32.mxu0 %vm681_vm0, %v682_v1  ;;  %v81_v3 = vld [vmem:[#allocation4 + $0x8] sm:$0xff]  ;;  %v82_v4 = vld [vmem:[#allocation4 + $0x10] sm:$0xff]  ;;  %v83_v6 = vld [vmem:[#allocation4 + $0x18] sm:$0xff]  ;;  %vm91_vm1 = vcmask 261120  }
  0x4b   :  { %274 = vmatprep.mubr.f32.mxu1 %v682_v1  ;;  %v490_v5 = vpack.c.bf16 %v81_v3, %v80_v2  ;;  %v167_v7 = vld [vmem:[#allocation6 + $0x8] sm:$0xff]  ;;  %v169_v8 = vld [vmem:[#allocation6 + $0x18] sm:$0xff]  ;;  %v166_v9 = vld [vmem:[#allocation6] sm:$0xff]  ;;  %v493_v11 = vpack.c.bf16 %v83_v6, %v82_v4 }
  0x4c   :  { %v168_v10 = vld [vmem:[#allocation6 + $0x10] sm:$0xff]  ;;  %v495_v12 = vpack.c.bf16 %v169_v8, %v167_v7  ;;  %v171_v14 = vld [vmem:[#allocation6 + $0x28] sm:$0xff]  ;;  %v173_v15 = vld [vmem:[#allocation6 + $0x38] sm:$0xff] }
  0x4d   :  { %491 = vmatpush3.bf16.msra.mxu0 %v490_v5  ;;  %v497_v13 = vpack.c.bf16 %v168_v10, %v166_v9  ;;  %v170_v16 = vld [vmem:[#allocation6 + $0x20] sm:$0xff]  ;;  %v499_v17 = vpack.c.bf16 %v173_v15, %v171_v14  ;;  %v172_v18 = vld [vmem:[#allocation6 + $0x30] sm:$0xff]  ;;  %v175_v19 = vld [vmem:[#allocation6 + $0x48] sm:$0xff] }
  0x4e   :  { %492 = vmatprep.subr.bf16.mxu0 %v680_v0  ;;  %v177_v20 = vld [vmem:[#allocation6 + $0x58] sm:$0xff]  ;;  %496 = vmatprep.subr.bf16.mxu1 %v495_v12  ;;  %v501_v21 = vpack.c.bf16 %v172_v18, %v170_v16  ;;  %v174_v24 = vld [vmem:[#allocation6 + $0x40] sm:$0xff]  ;;  %v176_v25 = vld [vmem:[#allocation6 + $0x50] sm:$0xff] }
  0x4f   :  { %498 = vmatpush1.bf16.msra.mxu1 %v497_v13  ;;  %v79_v22 = vld [vmem:[#allocation2] sm:$0xff]  ;;  %v503_v23 = vpack.c.bf16 %v177_v20, %v175_v19  ;;  %v179_v26 = vld [vmem:[#allocation6 + $0x68] sm:$0xff]  ;;  %v505_v28 = vpack.c.bf16 %v176_v25, %v174_v24  ;;  %v178_v30 = vld [vmem:[#allocation6 + $0x60] sm:$0xff] }
  0x50   :  { %500 = vmatprep.subr.bf16.mxu1 %v499_v17  ;;  %v181_v27 = vld [vmem:[#allocation6 + $0x78] sm:$0xff]  ;;  %v180_v31 = vld [vmem:[#allocation6 + $0x70] sm:$0xff]  ;;  %v183_v32 = vld [vmem:[#allocation6 + $0x88] sm:$0xff] }
  0x51   :  { %494 = vmatpush3.bf16.msra.mxu0 %v493_v11  ;;  %v507_v29 = vpack.c.bf16 %v181_v27, %v179_v26  ;;  %v185_v33 = vld [vmem:[#allocation6 + $0x98] sm:$0xff]  ;;  %v509_v34 = vpack.c.bf16 %v180_v31, %v178_v30  ;;  %v182_v36 = vld [vmem:[#allocation6 + $0x80] sm:$0xff]  ;;  %v184_v37 = vld [vmem:[#allocation6 + $0x90] sm:$0xff] }
  0x52   :  { %v511_v35 = vpack.c.bf16 %v185_v33, %v183_v32  ;;  %v187_v38 = vld [vmem:[#allocation6 + $0xa8] sm:$0xff]  ;;  %v189_v39 = vld [vmem:[#allocation6 + $0xb8] sm:$0xff]  ;;  %v513_v40 = vpack.c.bf16 %v184_v37, %v182_v36  ;;  %v186_v42 = vld [vmem:[#allocation6 + $0xa0] sm:$0xff] }
  0x53   :  { %502 = vmatpush1.bf16.msra.mxu1 %v501_v21  ;;  %v515_v41 = vpack.c.bf16 %v189_v39, %v187_v38  ;;  %v188_v43 = vld [vmem:[#allocation6 + $0xb0] sm:$0xff]  ;;  %v191_v44 = vld [vmem:[#allocation6 + $0xc8] sm:$0xff]  ;;  %v193_v45 = vld [vmem:[#allocation6 + $0xd8] sm:$0xff] }
  0x54   :  { %487 = vmatmul.mubr.msk.f32.vlgmr.msra.gmra.mrb[0].mxu0 %vm91_vm1, %v79_v22  ;;  %504 = vmatprep.subr.bf16.mxu1 %v503_v23  ;;  %v517_v46 = vpack.c.bf16 %v188_v43, %v186_v42  ;;  %v519_v47 = vpack.c.bf16 %v193_v45, %v191_v44  ;;  %v190_v48 = vld [vmem:[#allocation6 + $0xc0] sm:$0xff]  ;;  %v192_v49 = vld [vmem:[#allocation6 + $0xd0] sm:$0xff]  ;;  %v195_v51 = vld [vmem:[#allocation6 + $0xe8] sm:$0xff] }
  0x55   :  { %v521_v50 = vpack.c.bf16 %v192_v49, %v190_v48  ;;  %v197_v52 = vld [vmem:[#allocation6 + $0xf8] sm:$0xff]  ;;  %v194_v54 = vld [vmem:[#allocation6 + $0xe0] sm:$0xff]  ;;  %v196_v55 = vld [vmem:[#allocation6 + $0xf0] sm:$0xff] }
  0x56   :  { %v523_v53 = vpack.c.bf16 %v197_v52, %v195_v51  ;;  %v525_v56 = vpack.c.bf16 %v196_v55, %v194_v54  ;;  %v299_v57 = vld [vmem:[#allocation7 + $0x80] sm:$0xff]  ;;  %v300_v58 = vld [vmem:[#allocation7 + $0x88] sm:$0xff]  ;;  %v301_v62 = vld [vmem:[#allocation7 + $0x90] sm:$0xff] }
  0x57   :  { %506 = vmatpush1.bf16.msra.mxu1 %v505_v28  ;;  %v283_v59 = vld [vmem:[#allocation7] sm:$0xff]  ;;  %v527_v60 = vpack.c.bf16 %v300_v58, %v299_v57  ;;  %v284_v61 = vld [vmem:[#allocation7 + $0x8] sm:$0xff]  ;;  %v302_v63 = vld [vmem:[#allocation7 + $0x98] sm:$0xff] }
  0x58   :  { %508 = vmatprep.subr.bf16.mxu1 %v507_v29  ;;  %v529_v0 = vpack.c.bf16 %v284_v61, %v283_v59  ;;  %v531_v1 = vpack.c.bf16 %v302_v63, %v301_v62  ;;  %v285_v2 = vld [vmem:[#allocation7 + $0x10] sm:$0xff]  ;;  %v286_v3 = vld [vmem:[#allocation7 + $0x18] sm:$0xff]  ;;  %v303_v4 = vld [vmem:[#allocation7 + $0xa0] sm:$0xff] }
  0x59   :  { %528 = vmatprep.subr.bf16.mxu0 %v527_v60  ;;  %v304_v5 = vld [vmem:[#allocation7 + $0xa8] sm:$0xff]  ;;  %v533_v6 = vpack.c.bf16 %v286_v3, %v285_v2  ;;  %v287_v8 = vld [vmem:[#allocation7 + $0x20] sm:$0xff]  ;;  %v305_v10 = vld [vmem:[#allocation7 + $0xb0] sm:$0xff] }
  0x5a   :  { %530 = vmatpush3.bf16.msra.mxu0 %v529_v0  ;;  %v535_v7 = vpack.c.bf16 %v304_v5, %v303_v4  ;;  %v288_v9 = vld [vmem:[#allocation7 + $0x28] sm:$0xff]  ;;  %v306_v11 = vld [vmem:[#allocation7 + $0xb8] sm:$0xff]  ;;  %v289_v14 = vld [vmem:[#allocation7 + $0x30] sm:$0xff] }
  0x5b   :  { %510 = vmatpush1.bf16.msra.mxu1 %v509_v34  ;;  %532 = vmatprep.subr.bf16.mxu0 %v531_v1  ;;  %v537_v12 = vpack.c.bf16 %v288_v9, %v287_v8  ;;  %v539_v13 = vpack.c.bf16 %v306_v11, %v305_v10  ;;  %v290_v15 = vld [vmem:[#allocation7 + $0x38] sm:$0xff]  ;;  %v307_v16 = vld [vmem:[#allocation7 + $0xc0] sm:$0xff]  ;;  %v308_v17 = vld [vmem:[#allocation7 + $0xc8] sm:$0xff] }
  0x5c   :  { %512 = vmatprep.subr.bf16.mxu1 %v511_v35  ;;  %v541_v18 = vpack.c.bf16 %v290_v15, %v289_v14  ;;  %v543_v19 = vpack.c.bf16 %v308_v17, %v307_v16  ;;  %v291_v20 = vld [vmem:[#allocation7 + $0x40] sm:$0xff]  ;;  %v292_v21 = vld [vmem:[#allocation7 + $0x48] sm:$0xff]  ;;  %v309_v22 = vld [vmem:[#allocation7 + $0xd0] sm:$0xff] }
  0x5d   :  { %v310_v23 = vld [vmem:[#allocation7 + $0xd8] sm:$0xff]  ;;  %v545_v24 = vpack.c.bf16 %v292_v21, %v291_v20  ;;  %v293_v26 = vld [vmem:[#allocation7 + $0x50] sm:$0xff]  ;;  %v311_v28 = vld [vmem:[#allocation7 + $0xe0] sm:$0xff] }
  0x5e   :  { %534 = vmatpush3.bf16.msra.mxu0 %v533_v6  ;;  %v547_v25 = vpack.c.bf16 %v310_v23, %v309_v22  ;;  %v294_v27 = vld [vmem:[#allocation7 + $0x58] sm:$0xff]  ;;  %v312_v29 = vld [vmem:[#allocation7 + $0xe8] sm:$0xff]  ;;  %v295_v37 = vld [vmem:[#allocation7 + $0x60] sm:$0xff] }
  0x5f   :  { %514 = vmatpush1.bf16.msra.mxu1 %v513_v40  ;;  %536 = vmatprep.subr.bf16.mxu0 %v535_v7  ;;  %v549_v30 = vpack.c.bf16 %v294_v27, %v293_v26  ;;  %v551_v31 = vpack.c.bf16 %v312_v29, %v311_v28  ;;  %v434_v32 = vld [vmem:[%s794_s2] ss:$0 sm:$0xff]  ;;  %v313_v40 = vld [vmem:[#allocation7 + $0xf0] sm:$0xff]  ;;  %v298_v44 = vld [vmem:[#allocation7 + $0x78] sm:$0xff] }
  0x60   :  { %516 = vmatprep.subr.bf16.mxu1 %v515_v41  ;;  %v296_v38 = vld [vmem:[#allocation7 + $0x68] sm:$0xff]  ;;  %v314_v41 = vld [vmem:[#allocation7 + $0xf8] sm:$0xff]  ;;  %v297_v43 = vld [vmem:[#allocation7 + $0x70] sm:$0xff] }
  0x61   :  { %v553_v39 = vpack.c.bf16 %v296_v38, %v295_v37  ;;  %v555_v42 = vpack.c.bf16 %v314_v41, %v313_v40  ;;  %v557_v45 = vpack.c.bf16 %v298_v44, %v297_v43  ;;  %v198_v49 = vld [vmem:[%s796_s4] sm:$0x3] }
  0x62   :  { %538 = vmatpush3.bf16.msra.mxu0 %v537_v12  ;;  %v436_v61 = vld [vmem:[%s798_s6] ss:$0 sm:$0xff] }
  0x63   :  { %518 = vmatpush1.bf16.msra.mxu1 %v517_v46  ;;  %540 = vmatprep.subr.bf16.mxu0 %v539_v13  ;;  %v200_v46 = vlaneseq }
  0x64   :  { %520 = vmatprep.subr.bf16.mxu1 %v519_v47 }
  0x65   :  { %v201_v47 = vshrl.u32 %v200_v46, 7  ;;  %v393_v59 = vand.u32 127, %v200_v46 }
  0x66   :  { %542 = vmatpush3.bf16.msra.mxu0 %v541_v18 }
  0x67   :  { %522 = vmatpush1.bf16.msra.mxu1 %v521_v50  ;;  %544 = vmatprep.subr.bf16.mxu0 %v543_v19  ;;  %v202_v48 = vsub.s32 0, %v201_v47  ;;  %v206_v50 = vsub.s32 1, %v201_v47  ;;  %vm394_vm2 = vcmp.lt.s32.totalorder %v393_v59, 16 }
  0x68   :  { %524 = vmatprep.subr.bf16.mxu1 %v523_v53 }
  0x69   :  { %v203_v51 = vrot.slane %v198_v49, %v202_v48  ;;  %v207_v52 = vrot.slane %v198_v49, %v206_v50 }
  0x6a   :  { %546 = vmatpush3.bf16.msra.mxu0 %v545_v24 }
  0x6b   :  { %526 = vmatpush1.bf16.msra.mxu1 %v525_v56  ;;  %548 = vmatprep.subr.bf16.mxu0 %v547_v25 }
  0x6e   :  { %550 = vmatpush3.bf16.msra.mxu0 %v549_v30 }
  0x6f   :  { %552 = vmatprep.subr.bf16.mxu0 %v551_v31 }
  0x72   :  { %554 = vmatpush3.bf16.msra.mxu0 %v553_v39 }
  0x73   :  { %556 = vmatprep.subr.bf16.mxu0 %v555_v42 }
  0x76   :  { %558 = vmatpush3.bf16.msra.mxu0 %v557_v45 }
 0x127   :  { %v161_v33 = vpop.f32.mrb[0].mxu0 }
 0x128   :  { %v162_v34 = vadd.f32 %v434_v32, %v161_v33  ;;  %v488_v35 = vpop.f32.mrb[1].mxu0 }
 0x12a   :  { %v165_v36 = vmax.f32 %v162_v34, 0.0 }
 0x12c   :  { %275 = vmatmul.mubr.f32.vlgmr.msra.gmra.mrb[0].mxu1 %v165_v36 }
 0x1ff   :  { %v276_v53 = vpop.f32.mrb[0].mxu1 }
 0x200   :  { %v277_v54 = vadd.f32 %v276_v53, %v203_v51  ;;  %v278_v55 = vpop.f32.mrb[1].mxu1 }
 0x201   :  { %v279_v56 = vadd.f32 %v278_v55, %v207_v52 }
 0x202   :  { %v281_v58 = vmax.f32 %v277_v54, 0.0 }
 0x203   :  { %v282_v57 = vmax.f32 %v279_v56, 0.0 }
 0x205   :  { %386 = vmatprep.mubr.f32.mxu0 %v282_v57 }
 0x206   :  { %387 = vmatmul.mubr.f32.vlgmr.msra.gmra.mrb[2].mxu0 %v281_v58 }
 0x2d9   :  { %v475_v60 = vpop.f32.mrb[2].mxu0 }
 0x2da   :  { %v476_v62 = vpop.f32.mrb[3].mxu0 }
 0x2db   :  { %v477_v63 = vadd.f32 %v476_v62, %v475_v60 }
 0x2dd   :  { %v389_v0 = vadd.f32 %v477_v63, %v436_v61 }
 0x2df   :  { %v397_v1 = vsel %vm394_vm2, %v389_v0, -1e+30 }
 0x2e0   :  { %v408_v2 = vrot.slane %v397_v1, 4  ;;  %398 = vmax.xlane.f32.xlu0 %v397_v1 }
 0x2e2   :  { %v409_v3 = vmax.f32 %v397_v1, %v408_v2 }
 0x2e4   :  { %v410_v4 = vrot.slane %v409_v3, 2 }
 0x2e6   :  { %v411_v5 = vmax.f32 %v409_v3, %v410_v4 }
 0x2e8   :  { %v412_v6 = vrot.slane %v411_v5, 1 }
 0x2ea   :  { %v413_v7 = vmax.f32 %v411_v5, %v412_v6 }
 0x2ec   :  { %v414_v8 = vsub.f32 %v397_v1, %v413_v7 }
 0x2ee   :  { %v415_v9 = vmul.f32 1.442695, %v414_v8 }
 0x2f0   :  { %570 = vpow2.f32 %v415_v9 }
 0x2fa   :  { %v571_v10 = vpop.eup %570 }
 0x2fb   :  { %v417_v11 = vrot.slane %v571_v10, 4 }
 0x2fd   :  { %v418_v12 = vadd.f32 %v571_v10, %v417_v11 }
 0x2ff   :  { %v419_v13 = vrot.slane %v418_v12, 2 }
 0x301   :  { %v420_v14 = vadd.f32 %v419_v13, %v418_v12 }
 0x303   :  { %v421_v15 = vrot.slane %v420_v14, 1 }
 0x305   :  { %v422_v16 = vadd.f32 %v421_v15, %v420_v14 }
 0x307   :  { %572 = vrcp.f32 %v422_v16 }
 0x311   :  { %v573_v17 = vpop.eup %572 }
 0x312   :  { %v424_v18 = vmul.f32 %v573_v17, %v571_v10 }
 0x314   :  { %437 = vst [vmem:[%s799_s7 + $0x8] sm:$0xff] %v424_v18 }
 0x36d   :  { %v399_v19 = vpop.xlane.xlu0 %398 }
 0x36e   :  { %v400_v20 = vsub.f32 %v397_v1, %v399_v19 }
 0x370   :  { %v401_v21 = vmul.f32 1.442695, %v400_v20 }
 0x372   :  { %574 = vpow2.f32 %v401_v21 }
 0x37c   :  { %v575_v22 = vpop.eup %574 }
 0x37d   :  { %403 = vadd.xlane.f32.xlu0 %v575_v22 }
 0x40a   :  { %v404_v23 = vpop.xlane.xlu0 %403 }
 0x40b   :  { %576 = vrcp.f32 %v404_v23 }
 0x415   :  { %v577_v24 = vpop.eup %576 }
 0x416   :  { %v406_v25 = vmul.f32 %v577_v24, %v575_v22 }
 0x418   :  { %407 = vst [vmem:[%s799_s7] sm:$0xff] %v406_v25 }
 0x419   :  { %431 = vsyncpa [#allocation3], 1 }
 0x41a   :  { %432 = vsyncpa [#allocation5], 1 }
 0x41b   :  { %433 = vsyncpa [#allocation8], 1 }

</bundles_post_ra>
